<compile_context>
chip_gen: v7x
topology: tpu7x:2x2x1
jax: 0.10.0
libtpu: 0.0.40
codegen_flags: <defaults>
</compile_context>

<pallas_src>
import functools

import jax
import jax.numpy as jnp
import numpy as np
from jax.experimental import pallas as pl
from jax.experimental.pallas import tpu as pltpu

KERNEL_SIZE = 5
STRIDE = 2
PADDING = 2
OUTPUT_PADDING = 1


def _round_up(x, m):
    return ((x + m - 1) // m) * m


def _deconv_gemm_kernel(xm_ref, xh_ref, w_ref, bss_ref, o_ref, xbuf_ref, *, pitch):
    """3-dot phase-GEMM + conv-bias + ReLU + folded eval-mode BatchNorm.

    xm_ref:   (1, Mb, K3)    bf16  row block of the width-packed input
    xh_ref:   (1, Hb, K3)    bf16  2-image-row halo following the block
    w_ref:    (3, K3, Nc_t)  bf16  per-oy-tap phase-stacked weights (ox folded into K)
    bss_ref:  (8, Nc_t)      f32   row0=conv bias, row1=BN scale, row2=BN shift
    o_ref:    (1, Mb, Nc_t)  bf16
    xbuf_ref: (Mb+Hb, K3)    bf16  VMEM staging: block + halo, contiguous rows
    """
    mb = o_ref.shape[1]
    hb = xh_ref.shape[1]

    # Stage block + halo contiguously; the three oy taps then read aligned
    # static sublane-offset windows of this buffer straight into the MXU.
    xbuf_ref[0:mb, :] = xm_ref[0]
    xbuf_ref[mb:mb + hb, :] = xh_ref[0]

    acc = jnp.dot(xbuf_ref[0:mb, :], w_ref[0],
                  preferred_element_type=jnp.float32)
    acc = acc + jnp.dot(xbuf_ref[pitch:pitch + mb, :], w_ref[1],
                        preferred_element_type=jnp.float32)
    acc = acc + jnp.dot(xbuf_ref[2 * pitch:2 * pitch + mb, :], w_ref[2],
                        preferred_element_type=jnp.float32)

    bias = bss_ref[0:1, :]
    scale = bss_ref[1:2, :]
    shift = bss_ref[2:3, :]
    y = jnp.maximum(acc + bias, 0.0)                            # conv bias + ReLU
    o_ref[0, :, :] = (y * scale + shift).astype(o_ref.dtype)    # folded BN (eval)


def _vmem_need_bytes(mb, hb, k3, nc_t):
    # double-buffered pipelined blocks + single staging scratch + f32 accumulator
    dbuf = 2 * (mb * k3 * 2 + hb * k3 * 2 + 3 * k3 * nc_t * 2
                + 8 * nc_t * 4 + mb * nc_t * 2)
    return dbuf + (mb + hb) * k3 * 2 + mb * nc_t * 4


def _choose_tiles(m_img, hb, k3, nc, block_m, budget):
    """Pick (Mb, Nc_t): prefer the full Nc (grid-resident weights), big row blocks."""
    nc_tiles = [t for t in range(nc, 0, -128) if nc % t == 0]
    mb_max = _round_up(m_img, hb)
    target = max(block_m, 8 * hb)                 # keep halo/Mb <= 12.5 %
    mb0 = min(mb_max, max(hb, (target // hb) * hb))
    mb_floor = min(mb0, 4 * hb)
    for nc_t in nc_tiles:
        mb = mb0
        while _vmem_need_bytes(mb, hb, k3, nc_t) > budget and mb > mb_floor:
            mb = max(mb_floor, ((mb // 2) // hb) * hb)
        if _vmem_need_bytes(mb, hb, k3, nc_t) <= budget:
            return mb, nc_t
    return mb_floor, nc_tiles[-1]


def basic_deconv2d(x_nchw, w_t, conv_bias, gamma, beta, running_mean, running_var,
                   eps=1e-5, block_m=2048, out_dtype=jnp.float32):
    """x_nchw: (N, Cin, H, W).  w_t: (Cin, Cout, 5, 5) PyTorch ConvTranspose2d layout."""
    N, Cin, H, W = x_nchw.shape
    Cout = w_t.shape[1]
    Hout = (H - 1) * STRIDE - 2 * PADDING + KERNEL_SIZE + OUTPUT_PADDING  # = 2H
    Wout = (W - 1) * STRIDE - 2 * PADDING + KERNEL_SIZE + OUTPUT_PADDING  # = 2W

    # ---- phase-decomposed weight: (3, 3, Cin, 4*Cout) ------------------------
    # Output phase (ph, pw) = (ho%2, wo%2) only uses ConvTranspose taps with
    # ky==ph (mod 2), kx==pw (mod 2); those taps land on a 3x3 neighborhood of
    # the ORIGINAL x padded by 1:  tap (oy, ox) <-> (ky, kx) = (2*oy-ph, 2*ox-pw).
    w_flip = w_t[:, :, ::-1, ::-1]                       # regular-conv weight
    zero_blk = jnp.zeros((Cin, Cout), w_t.dtype)
    rows = []
    for oy in range(3):
        cols = []
        for ox in range(3):
            phase_blocks = []
            for ph in range(2):
                for pw in range(2):
                    ky = 2 * oy - ph
                    kx = 2 * ox - pw
                    if 0 <= ky < KERNEL_SIZE and 0 <= kx < KERNEL_SIZE:
                        phase_blocks.append(w_flip[:, :, ky, kx])
                    else:
                        phase_blocks.append(zero_blk)
            cols.append(jnp.concatenate(phase_blocks, axis=1))   # (Cin, 4*Cout)
        rows.append(jnp.stack(cols, axis=0))                     # (3, Cin, 4*Cout)
    w_big = jnp.stack(rows, axis=0)                              # (3, 3, Cin, 4*Cout)

    NC4 = 4 * Cout
    Cin_p = _round_up(Cin, 8)
    Nc = _round_up(NC4, 128)                    # lane-dense output / MXU N dim
    K3 = 3 * Cin_p                              # width (ox) taps folded into K
    # (3, 3, Cin_p, Nc) -> (3[oy], K3, Nc); ox blocks stacked along K in the
    # same order as the lane packing of x3 below.
    w3 = jnp.pad(w_big, ((0, 0), (0, 0), (0, Cin_p - Cin), (0, Nc - NC4)))
    w3 = w3.reshape(3, K3, Nc).astype(jnp.bfloat16)

    # ---- fold conv bias + eval-mode BatchNorm into one (8, Nc) side input ----
    bn_scale = gamma / jnp.sqrt(running_var + eps)
    bn_shift = beta - running_mean * bn_scale
    bss = jnp.zeros((8, Nc), jnp.float32)
    bss = bss.at[0, :NC4].set(jnp.tile(conv_bias.astype(jnp.float32), 4))
    bss = bss.at[1, :NC4].set(jnp.tile(bn_scale.astype(jnp.float32), 4))
    bss = bss.at[2, :NC4].set(jnp.tile(bn_shift.astype(jnp.float32), 4))

    # ---- width-packed (3x) input, flattened with a 16-aligned row pitch ------
    x_nhwc = jnp.transpose(x_nchw, (0, 2, 3, 1)).astype(jnp.bfloat16)
    x_nhwc = jnp.pad(x_nhwc, ((0, 0), (0, 0), (0, 0), (0, Cin_p - Cin)))
    x_pad = jnp.pad(x_nhwc, ((0, 0), (1, 1), (1, 1), (0, 0)))   # (N, H+2, W+2, Cin_p)
    # lane pack of the 3 ox taps: channel block ox holds x_pad[..., w+ox, :]
    x3 = jnp.concatenate(
        [x_pad[:, :, 0:W, :], x_pad[:, :, 1:W + 1, :], x_pad[:, :, 2:W + 2, :]],
        axis=-1)                                                  # (N, H+2, W, K3)
    Wr = _round_up(W, 16)     # row pitch: multiple of 16 keeps bf16 sublane tiles aligned
    x3 = jnp.pad(x3, ((0, 0), (0, 0), (0, Wr - W), (0, 0)))      # (N, H+2, Wr, K3)

    # ---- tiling under a generation-aware VMEM budget --------------------------
    Hb = 2 * Wr                                 # halo rows = 2 image rows
    M_img = H * Wr                              # base positions per image (row-major)
    try:
        vmem_cap = int(getattr(pltpu.get_tpu_info(), "vmem_capacity_bytes", 64 << 20))
    except Exception:                           # conservative fallback (v7x per-core size)
        vmem_cap = 64 << 20
    vmem_cap = max(vmem_cap, 32 << 20)
    cap = (vmem_cap * 3) // 4                   # leave >=1/4 for compiler scratch etc.
    budget = cap - (8 << 20)
    Mb, Nc_t = _choose_tiles(M_img, Hb, K3, Nc, block_m, budget)
    num_mb = -(-M_img // Mb)
    num_nc = Nc // Nc_t
    Mpad = num_mb * Mb
    L = Mpad + Hb                               # per-image flat rows incl. last-block halo

    x3f = x3.reshape(N, (H + 2) * Wr, K3)
    if L > (H + 2) * Wr:
        x3f = jnp.pad(x3f, ((0, 0), (0, L - (H + 2) * Wr), (0, 0)))

    need = _vmem_need_bytes(Mb, Hb, K3, Nc_t)
    vmem_limit = int(min(cap, max(32 << 20, need + (16 << 20))))
    mb_per_hb = Mb // Hb

    # Grid: long (batch, row-block) axes are "parallel" and lead the grid so a
    # multi-TensorCore chip shards them; when Nc must be tiled (rare), the Nc
    # tile is OUTERMOST so the weight/bss block index is constant over the long
    # inner loop and Pallas skips the re-DMA.
    if num_nc == 1:
        grid = (N, num_mb)
        sem = ("parallel", "parallel")
        main_map = lambda n, i: (n, i, 0)
        halo_map = lambda n, i: (n, (i + 1) * mb_per_hb, 0)
        w_map = lambda n, i: (0, 0, 0)
        bss_map = lambda n, i: (0, 0)
        out_map = lambda n, i: (n, i, 0)
    else:
        grid = (num_nc, N, num_mb)
        sem = ("parallel", "parallel", "parallel")
        main_map = lambda j, n, i: (n, i, 0)
        halo_map = lambda j, n, i: (n, (i + 1) * mb_per_hb, 0)
        w_map = lambda j, n, i: (0, 0, j)
        bss_map = lambda j, n, i: (0, j)
        out_map = lambda j, n, i: (n, i, j)

    flops = 2 * 3 * K3 * Nc * N * Mpad
    bytes_accessed = (num_nc * N * (L + num_mb * Hb) * K3 * 2
                      + 3 * K3 * Nc * 2 + 8 * Nc * 4 + N * Mpad * Nc * 2)

    kernel = functools.partial(_deconv_gemm_kernel, pitch=Wr)
    out_flat = pl.pallas_call(
        kernel,
        out_shape=jax.ShapeDtypeStruct((N, Mpad, Nc), jnp.bfloat16),
        grid_spec=pltpu.PrefetchScalarGridSpec(
            num_scalar_prefetch=0,
            grid=grid,
            in_specs=[
                pl.BlockSpec((1, Mb, K3), main_map),    # row block
                pl.BlockSpec((1, Hb, K3), halo_map),    # 2-row halo (same array)
                pl.BlockSpec((3, K3, Nc_t), w_map),     # grid-resident weights
                pl.BlockSpec((8, Nc_t), bss_map),       # bias / BN scale / BN shift
            ],
            out_specs=pl.BlockSpec((1, Mb, Nc_t), out_map),
            scratch_shapes=[pltpu.VMEM((Mb + Hb, K3), jnp.bfloat16)],
        ),
        compiler_params=pltpu.CompilerParams(
            dimension_semantics=sem,
            vmem_limit_bytes=vmem_limit),
        cost_estimate=pl.CostEstimate(flops=int(flops), transcendentals=0,
                                      bytes_accessed=int(bytes_accessed)),
    )(x3f, x3f, w3, bss)

    # ---- un-flatten: drop padded rows/cols, interleave the 4 phases ----------
    # NOTE: padded rows/cols hold ReLU(bias)*scale+shift garbage; they are
    # sliced off here -- do not remove these slices or alias the raw output.
    out = out_flat[:, :M_img, :NC4].reshape(N, H, Wr, NC4)[:, :, :W, :]
    out = out.reshape(N, H, W, 2, 2, Cout)
    out = jnp.transpose(out, (0, 1, 3, 2, 4, 5)).reshape(N, Hout, Wout, Cout)
    # TODO(synk): training-mode BatchNorm (batch statistics) and Dropout(p=0.5)
    # sampling are not implemented; this is the inference-mode forward pass.
    return jnp.transpose(out, (0, 3, 1, 2)).astype(out_dtype)    # NHWC -> NCHW


def _reference_numpy(x, w_t, conv_bias, gamma, beta, mean, var, eps=1e-5):
    """Independent scatter-based reference for ConvTranspose2d + ReLU + BN(eval)."""
    x, w_t = np.asarray(x), np.asarray(w_t)
    N, Cin, H, W = x.shape
    Cout = w_t.shape[1]
    k = KERNEL_SIZE
    Hout, Wout = 2 * H, 2 * W
    full = np.zeros((N, Cout, 2 * H + 3, 2 * W + 3), np.float32)
    for ky in range(k):
        for kx in range(k):
            full[:, :, ky:ky + 2 * H - 1:2, kx:kx + 2 * W - 1:2] += np.einsum(
                'nchw,cd->ndhw', x, w_t[:, :, ky, kx])
    y = full[:, :, PADDING:PADDING + Hout, PADDING:PADDING + Wout]
    y = y + np.asarray(conv_bias).reshape(1, -1, 1, 1)
    y = np.maximum(y, 0.0)
    scale = np.asarray(gamma) / np.sqrt(np.asarray(var) + eps)
    shift = np.asarray(beta) - np.asarray(mean) * scale
    return y * scale.reshape(1, -1, 1, 1) + shift.reshape(1, -1, 1, 1)


if __name__ == "__main__":
    N, Cin, Cout, H, W = 2, 4, 8, 16, 16

    key = jax.random.PRNGKey(0)
    kx, kw, kb, kg, kbe, km, kv = jax.random.split(key, 7)
    x = jax.random.normal(kx, (N, Cin, H, W), jnp.float32)
    w_t = jax.random.normal(kw, (Cin, Cout, KERNEL_SIZE, KERNEL_SIZE), jnp.float32) * 0.1
    conv_bias = jax.random.normal(kb, (Cout,), jnp.float32) * 0.1
    gamma = 1.0 + 0.1 * jax.random.normal(kg, (Cout,), jnp.float32)
    beta = 0.1 * jax.random.normal(kbe, (Cout,), jnp.float32)
    running_mean = 0.1 * jax.random.normal(km, (Cout,), jnp.float32)
    running_var = jnp.abs(1.0 + 0.1 * jax.random.normal(kv, (Cout,), jnp.float32))

    fwd = jax.jit(functools.partial(basic_deconv2d, eps=1e-5))
    y = fwd(x, w_t, conv_bias, gamma, beta, running_mean, running_var)
    y = jax.block_until_ready(y)

    assert y.shape == (N, Cout, 2 * H, 2 * W), y.shape

    ref = _reference_numpy(x, w_t, conv_bias, gamma, beta, running_mean, running_var)
    # tolerance accounts for bf16 MXU inputs and the bf16 kernel writeback
    # (f32 accumulation / f32 epilogue).  Re-validate at production Cin sizes.
    np.testing.assert_allclose(np.asarray(y), ref, rtol=4e-2, atol=4e-2)

    print("KERNEL_OK")
</pallas_src>

<mosaic_0001>
module attributes {stable_mosaic.version = 11 : i64} {
  func.func @_deconv_gemm_kernel(%arg0: i32, %arg1: i32, %arg2: memref<1x256x24xbf16, #tpu.memory_space<vmem>>, %arg3: memref<1x32x24xbf16, #tpu.memory_space<vmem>>, %arg4: memref<3x24x128xbf16, #tpu.memory_space<vmem>>, %arg5: memref<8x128xf32, #tpu.memory_space<vmem>>, %arg6: memref<1x256x128xbf16, #tpu.memory_space<vmem>>, %arg7: memref<288x24xbf16, #tpu.memory_space<vmem>>) attributes {dimension_semantics = [#tpu.dimension_semantics<parallel>, #tpu.dimension_semantics<parallel>], iteration_bounds = array<i64: 2, 1>, scalar_prefetch = 0 : i64, scratch_operands = 1 : i64, tpu.core_type = #tpu.core_type<tc>, window_params = [{transform_indices = @transform_0, window_bounds = array<i64: 1, 256, 24>}, {transform_indices = @transform_1, window_bounds = array<i64: 1, 32, 24>}, {pipeline_mode = #tpu.pipeline_mode<synchronous>, transform_indices = @transform_2, window_bounds = array<i64: 3, 24, 128>}, {pipeline_mode = #tpu.pipeline_mode<synchronous>, transform_indices = @transform_3, window_bounds = array<i64: 8, 128>}, {transform_indices = @transform_4, window_bounds = array<i64: 1, 256, 128>}]} {
    %c0 = arith.constant 0 : index
    %c0_0 = arith.constant 0 : index
    %c0_1 = arith.constant 0 : index
    %0 = vector.load %arg2[%c0, %c0_0, %c0_1] : memref<1x256x24xbf16, #tpu.memory_space<vmem>>, vector<1x256x24xbf16>
    %1 = vector.shape_cast %0 : vector<1x256x24xbf16> to vector<256x24xbf16>
    %c0_2 = arith.constant 0 : index
    %c0_3 = arith.constant 0 : index
    %2 = vector.load %arg7[%c0_2, %c0_3] : memref<288x24xbf16, #tpu.memory_space<vmem>>, vector<256x24xbf16>
    tpu.vector_store %arg7[%c0_2, %c0_3], %1 {strides = array<i32>} : memref<288x24xbf16, #tpu.memory_space<vmem>>, vector<256x24xbf16>,
    %c0_4 = arith.constant 0 : index
    %c0_5 = arith.constant 0 : index
    %c0_6 = arith.constant 0 : index
    %3 = vector.load %arg3[%c0_4, %c0_5, %c0_6] : memref<1x32x24xbf16, #tpu.memory_space<vmem>>, vector<1x32x24xbf16>
    %4 = vector.shape_cast %3 : vector<1x32x24xbf16> to vector<32x24xbf16>
    %c256 = arith.constant 256 : index
    %c0_7 = arith.constant 0 : index
    %5 = vector.load %arg7[%c256, %c0_7] : memref<288x24xbf16, #tpu.memory_space<vmem>>, vector<32x24xbf16>
    tpu.vector_store %arg7[%c256, %c0_7], %4 {strides = array<i32>} : memref<288x24xbf16, #tpu.memory_space<vmem>>, vector<32x24xbf16>,
    %c0_8 = arith.constant 0 : index
    %c0_9 = arith.constant 0 : index
    %6 = vector.load %arg7[%c0_8, %c0_9] : memref<288x24xbf16, #tpu.memory_space<vmem>>, vector<256x24xbf16>
    %c0_10 = arith.constant 0 : index
    %c0_11 = arith.constant 0 : index
    %c0_12 = arith.constant 0 : index
    %7 = vector.load %arg4[%c0_10, %c0_11, %c0_12] : memref<3x24x128xbf16, #tpu.memory_space<vmem>>, vector<1x24x128xbf16>
    %8 = vector.shape_cast %7 : vector<1x24x128xbf16> to vector<24x128xbf16>
    %cst = arith.constant dense<0.000000e+00> : vector<256x128xf32>
    %9 = tpu.matmul %6, %8, %cst {dimension_numbers = #tpu.dot_dimension_numbers<[1], [0], [0], [1], [0, 0, 1, 1], [], []>} : vector<256x24xbf16>, vector<24x128xbf16>, vector<256x128xf32> -> vector<256x128xf32>
    %c16 = arith.constant 16 : index
    %c0_13 = arith.constant 0 : index
    %10 = vector.load %arg7[%c16, %c0_13] : memref<288x24xbf16, #tpu.memory_space<vmem>>, vector<256x24xbf16>
    %c1 = arith.constant 1 : index
    %c0_14 = arith.constant 0 : index
    %c0_15 = arith.constant 0 : index
    %11 = vector.load %arg4[%c1, %c0_14, %c0_15] : memref<3x24x128xbf16, #tpu.memory_space<vmem>>, vector<1x24x128xbf16>
    %12 = vector.shape_cast %11 : vector<1x24x128xbf16> to vector<24x128xbf16>
    %cst_16 = arith.constant dense<0.000000e+00> : vector<256x128xf32>
    %13 = tpu.matmul %10, %12, %cst_16 {dimension_numbers = #tpu.dot_dimension_numbers<[1], [0], [0], [1], [0, 0, 1, 1], [], []>} : vector<256x24xbf16>, vector<24x128xbf16>, vector<256x128xf32> -> vector<256x128xf32>
    %14 = arith.addf %9, %13 : vector<256x128xf32>
    %c32 = arith.constant 32 : index
    %c0_17 = arith.constant 0 : index
    %15 = vector.load %arg7[%c32, %c0_17] : memref<288x24xbf16, #tpu.memory_space<vmem>>, vector<256x24xbf16>
    %c2 = arith.constant 2 : index
    %c0_18 = arith.constant 0 : index
    %c0_19 = arith.constant 0 : index
    %16 = vector.load %arg4[%c2, %c0_18, %c0_19] : memref<3x24x128xbf16, #tpu.memory_space<vmem>>, vector<1x24x128xbf16>
    %17 = vector.shape_cast %16 : vector<1x24x128xbf16> to vector<24x128xbf16>
    %cst_20 = arith.constant dense<0.000000e+00> : vector<256x128xf32>
    %18 = tpu.matmul %15, %17, %cst_20 {dimension_numbers = #tpu.dot_dimension_numbers<[1], [0], [0], [1], [0, 0, 1, 1], [], []>} : vector<256x24xbf16>, vector<24x128xbf16>, vector<256x128xf32> -> vector<256x128xf32>
    %19 = arith.addf %14, %18 : vector<256x128xf32>
    %c0_21 = arith.constant 0 : index
    %c0_22 = arith.constant 0 : index
    %20 = vector.load %arg5[%c0_21, %c0_22] : memref<8x128xf32, #tpu.memory_space<vmem>>, vector<1x128xf32>
    %c1_23 = arith.constant 1 : index
    %c0_24 = arith.constant 0 : index
    %21 = vector.load %arg5[%c1_23, %c0_24] : memref<8x128xf32, #tpu.memory_space<vmem>>, vector<1x128xf32>
    %c2_25 = arith.constant 2 : index
    %c0_26 = arith.constant 0 : index
    %22 = vector.load %arg5[%c2_25, %c0_26] : memref<8x128xf32, #tpu.memory_space<vmem>>, vector<1x128xf32>
    %23 = vector.broadcast %20 : vector<1x128xf32> to vector<256x128xf32>
    %24 = arith.addf %19, %23 : vector<256x128xf32>
    %cst_27 = arith.constant 0.000000e+00 : f32
    %25 = vector.broadcast %cst_27 : f32 to vector<256x128xf32>
    %26 = arith.maximumf %24, %25 : vector<256x128xf32>
    %27 = vector.broadcast %21 : vector<1x128xf32> to vector<256x128xf32>
    %28 = arith.mulf %26, %27 : vector<256x128xf32>
    %29 = vector.broadcast %22 : vector<1x128xf32> to vector<256x128xf32>
    %30 = arith.addf %28, %29 : vector<256x128xf32>
    %31 = arith.truncf %30 : vector<256x128xf32> to vector<256x128xbf16>
    %c0_28 = arith.constant 0 : index
    %c0_29 = arith.constant 0 : index
    %c0_30 = arith.constant 0 : index
    %32 = vector.load %arg6[%c0_28, %c0_29, %c0_30] : memref<1x256x128xbf16, #tpu.memory_space<vmem>>, vector<1x256x128xbf16>
    %33 = vector.shape_cast %32 : vector<1x256x128xbf16> to vector<256x128xbf16>
    %34 = vector.shape_cast %31 : vector<256x128xbf16> to vector<1x256x128xbf16>
    tpu.vector_store %arg6[%c0_28, %c0_29, %c0_30], %34 {strides = array<i32>} : memref<1x256x128xbf16, #tpu.memory_space<vmem>>, vector<1x256x128xbf16>,
    return
  }
  func.func @transform_0(%arg0: i32, %arg1: i32) -> (i32, i32, i32) {
    %c0_i32 = arith.constant 0 : i32
    %c0_i32_0 = arith.constant 0 : i32
    return %arg0, %arg1, %c0_i32 : i32, i32, i32
  }
  func.func @transform_1(%arg0: i32, %arg1: i32) -> (i32, i32, i32) {
    %c1_i32 = arith.constant 1 : i32
    %0 = arith.addi %arg1, %c1_i32 : i32
    %c8_i32 = arith.constant 8 : i32
    %1 = arith.muli %0, %c8_i32 : i32
    %c0_i32 = arith.constant 0 : i32
    %c0_i32_0 = arith.constant 0 : i32
    return %arg0, %1, %c0_i32 : i32, i32, i32
  }
  func.func @transform_2(%arg0: i32, %arg1: i32) -> (i32, i32, i32) {
    %c0_i32 = arith.constant 0 : i32
    %c0_i32_0 = arith.constant 0 : i32
    %c0_i32_1 = arith.constant 0 : i32
    %c0_i32_2 = arith.constant 0 : i32
    return %c0_i32, %c0_i32_0, %c0_i32_1 : i32, i32, i32
  }
  func.func @transform_3(%arg0: i32, %arg1: i32) -> (i32, i32) {
    %c0_i32 = arith.constant 0 : i32
    %c0_i32_0 = arith.constant 0 : i32
    %c0_i32_1 = arith.constant 0 : i32
    return %c0_i32, %c0_i32_0 : i32, i32
  }
  func.func @transform_4(%arg0: i32, %arg1: i32) -> (i32, i32, i32) {
    %c0_i32 = arith.constant 0 : i32
    %c0_i32_0 = arith.constant 0 : i32
    return %arg0, %arg1, %c0_i32 : i32, i32, i32
  }
}

</mosaic_0001>

<bundles_post_ra>
// kernel: tile.28
= control target key start
LH: loop header
LB: loop body
LE: loop exit
PB: predicated region body
PF: predicated region fallthrough
CT: control target
= control target key end

     0   :  { %s22_s0 = inlined_call_operand.vmem [shape: f32[8], index: 0, kind: input, shape index: {}]   ;;  %s23_s1 = inlined_call_operand.vmem [shape: f32[4,8], index: 1, kind: output, shape index: {}]  }
   0x1   :  { %v4_v0 = vld [vmem:[%s22_s0] ss:$0 sm:$0xff] }
   0x2   :  { %5 = vst [vmem:[%s23_s1] sm:$0xf] %v4_v0 }

// kernel: basic_deconv2d.1
= control target key start
LH: loop header
LB: loop body
LE: loop exit
PB: predicated region body
PF: predicated region fallthrough
CT: control target
= control target key end

     0   :  { %s2162_s15 = smov 0   ;;  %s2164_s16 = smov 0   ;;  %s2465_s0 = inlined_call_operand.vmem [shape: bf16[2,288,24], index: 0, kind: input, shape index: {}, may-alias: {0,1}]   ;;  %s2466_s1 = inlined_call_operand.vmem [shape: bf16[2,288,24], index: 1, kind: input, shape index: {}, may-alias: {0,1}]   ;;  %s2467_s2 = inlined_call_operand.vmem [shape: bf16[3,24,128], index: 2, kind: input, shape index: {}]   ;;  %s2468_s3 = inlined_call_operand.vmem [shape: f32[8,128], index: 3, kind: input, shape index: {}]   ;;  %s2469_s4 = inlined_call_operand.vmem [shape: bf16[2,256,128], index: 4, kind: output, shape index: {}]  }
   0x1   :  { %s2166_s17 = smov 0  }
   0x2 LB: > { %s26_s18 = sadd.s32 1, %s2131_s16  ;;  %p1578_p0 = scmp.ge.s32.totalorder %s2135_s17, 1  ;;  %s2135_s17 = sphi %s2166_s17, %s14_s17   ;;  %s2131_s16 = sphi %s2164_s16, %s2471_s16   ;;  %s2127_s15 = sphi %s2162_s15, %s2470_s15  }
   0x3   : > { %p28_p1 = scmp.ge.s32.totalorder %s26_s18, 2  ;;  %p216_p2 = scmp.lt.s32.totalorder %s2135_s17, 3 }
   0x5   : > { %s2473_s18 = smov (%p28_p1, %s26_s18), 0  ;;  %p217_p3 = pnand %p1578_p0, %p216_p2 }
   0x6   : > { %v2089_v0 = vld [vmem:[%s2467_s2 + $0xc] sm:$0xff] (!%p217_p3)   ;;  %vm552_vm0 = vcmask (!%p217_p3), 1043456   ;;  %v2090_v1 = vld [vmem:[%s2467_s2] sm:$0xff] (!%p217_p3)   ;;  %p270_p4 = scmp.lt.s32.totalorder (!%p217_p3), %s2127_s15, 1  ;;  %v2091_v2 = vld [vmem:[%s2467_s2 + $0x14] ss:$0 sps:$4 sm:$0xff] (!%p217_p3)  }
   0x7   : > { %220 = sbr.rel (%p217_p3) target bundleno = 344 (0x158), region = 36  ;;  %1882 = vmatprep.subr.bf16.mxu1 (!%p217_p3), %v2089_v0  ;;  %1918 = vmatprep.subr.bf16.mxu0 (!%p217_p3), %v2090_v1  ;;  %v2092_v3 = vld [vmem:[%s2467_s2 + $0x8] ss:$0 sps:$4 sm:$0xff] (!%p217_p3)   ;;  %v554_v4 = vsel (!%p217_p3), %vm552_vm0, %v2091_v2, 0  ;;  %v2095_v6 = vld [vmem:[%s2467_s2 + $0x18] sm:$0xff] (!%p217_p3)   ;;  %vm436_vm1 = vcmask (!%p217_p3), 195584  }
   0x8   : > { %1883 = vmatpush3.bf16.msra.mxu1 (!%p217_p3), %v2089_v0  ;;  %1919 = vmatpush3.bf16.msra.mxu0 (!%p217_p3), %v2090_v1  ;;  %v730_v5 = vsel (!%p217_p3), %vm552_vm0, %v2092_v3, 0  ;;  %v2100_v15 = vld [vmem:[%s2467_s2 + $0x20] ss:$0 sps:$4 sm:$0xff] (!%p217_p3)  }
   0x9   : > { %2058 = vmatprep.subr.msk.bf16.mxu1 (!%p217_p3), %vm552_vm0, %v2091_v2  ;;  %2059 = vmatprep.subr.msk.bf16.mxu0 (!%p217_p3), %vm552_vm0, %v2092_v3  ;;  %v971_v24 = vsel (!%p217_p3), %vm552_vm0, %v2100_v15, 0  ;;  %v2319_v62 = vld [vmem:[%s2468_s3] ss:$0 sm:$0xff] (!%p217_p3) }
   0xc   : > { %1885 = vmatpush3.bf16.msra.mxu1 (!%p217_p3), %v554_v4  ;;  %1921 = vmatpush3.bf16.msra.mxu0 (!%p217_p3), %v730_v5 }
   0xd   : > { %1990 = vmatprep.subr.bf16.mxu1 (!%p217_p3), %v2090_v1  ;;  %1954 = vmatprep.subr.bf16.mxu0 (!%p217_p3), %v2095_v6 }
   0xe   : > { %s2475_s15 = smov (!%p270_p4, %s2127_s15), 1 }
   0xf   : > { %s2062_s27 = smul.u32 144, %s2475_s15  ;;  %s1700_s23 = sshll.u32 %s2475_s15, 7 }
  0x10   : > { %s2347_s25 = scalar_lea.vmem %s2469_s4, %s1700_s23 }
  0x11   : > { %s2207_s6 = scalar_lea.vmem %s2465_s0, %s2062_s27  ;;  %s1699_s9 = sadd.s32 128, %s2062_s27 }
  0x12   : > { %v2093_v7 = vld [vmem:[%s2207_s6 + $0x8] sm:$0xff]   ;;  %v2094_v8 = vld [vmem:[%s2207_s6] sm:$0xff]   ;;  %v2096_v9 = vld [vmem:[%s2207_s6 + $0x10] sm:$0xff]   ;;  %s293_s12 = scalar_lea.vmem %s2466_s1, %s1699_s9 }
  0x13   : > { %438 = vst.msk [vmem:[#allocation2 + $0x8] sm:$0xff] %vm436_vm1, %v2093_v7  ;;  %437 = vst.msk [vmem:[#allocation2] sm:$0xff] %vm436_vm1, %v2094_v8  ;;  %v2097_v10 = vld [vmem:[%s2207_s6 + $0x18] sm:$0xff]   ;;  %v2098_v11 = vld [vmem:[%s2207_s6 + $0x20] sm:$0xff]  }
  0x14   : > { %439 = vst.msk [vmem:[#allocation2 + $0x10] sm:$0xff] %vm436_vm1, %v2096_v9  ;;  %440 = vst.msk [vmem:[#allocation2 + $0x18] sm:$0xff] %vm436_vm1, %v2097_v10  ;;  %v2099_v12 = vld [vmem:[%s2207_s6 + $0x28] sm:$0xff]   ;;  %v2101_v13 = vld [vmem:[%s2207_s6 + $0x30] sm:$0xff]  }
  0x15   : > { %441 = vst.msk [vmem:[#allocation2 + $0x20] sm:$0xff] %vm436_vm1, %v2098_v11  ;;  %442 = vst.msk [vmem:[#allocation2 + $0x28] sm:$0xff] %vm436_vm1, %v2099_v12  ;;  %v2102_v14 = vld [vmem:[%s2207_s6 + $0x38] sm:$0xff]   ;;  %v2103_v16 = vld [vmem:[%s2207_s6 + $0x40] sm:$0xff]  }
  0x16   : > { %443 = vst.msk [vmem:[#allocation2 + $0x30] sm:$0xff] %vm436_vm1, %v2101_v13  ;;  %444 = vst.msk [vmem:[#allocation2 + $0x38] sm:$0xff] %vm436_vm1, %v2102_v14  ;;  %v2104_v19 = vld [vmem:[%s2207_s6 + $0x48] sm:$0xff]   ;;  %v2105_v21 = vld [vmem:[%s2207_s6 + $0x50] sm:$0xff]  }
  0x17   : > { %445 = vst.msk [vmem:[#allocation2 + $0x40] sm:$0xff] %vm436_vm1, %v2103_v16  ;;  %446 = vst.msk [vmem:[#allocation2 + $0x48] sm:$0xff] %vm436_vm1, %v2104_v19  ;;  %v2106_v23 = vld [vmem:[%s2207_s6 + $0x58] sm:$0xff]   ;;  %v2107_v25 = vld [vmem:[%s2207_s6 + $0x60] sm:$0xff]  }
  0x18   : > { %447 = vst.msk [vmem:[#allocation2 + $0x50] sm:$0xff] %vm436_vm1, %v2105_v21  ;;  %448 = vst.msk [vmem:[#allocation2 + $0x58] sm:$0xff] %vm436_vm1, %v2106_v23  ;;  %v2108_v27 = vld [vmem:[%s2207_s6 + $0x68] sm:$0xff]   ;;  %v2109_v29 = vld [vmem:[%s2207_s6 + $0x70] sm:$0xff]  }
  0x19   : > { %449 = vst.msk [vmem:[#allocation2 + $0x60] sm:$0xff] %vm436_vm1, %v2107_v25  ;;  %450 = vst.msk [vmem:[#allocation2 + $0x68] sm:$0xff] %vm436_vm1, %v2108_v27  ;;  %v2110_v30 = vld [vmem:[%s2207_s6 + $0x78] sm:$0xff]   ;;  %v2111_v31 = vld [vmem:[%s293_s12] sm:$0xff]  }
  0x1a   : > { %v472_v17 = vld [vmem:[#allocation2 + $0x8] sm:$0xff]  ;;  %v471_v18 = vld [vmem:[#allocation2] sm:$0xff]  ;;  %451 = vst.msk [vmem:[#allocation2 + $0x70] sm:$0xff] %vm436_vm1, %v2109_v29  ;;  %452 = vst.msk [vmem:[#allocation2 + $0x78] sm:$0xff] %vm436_vm1, %v2110_v30 }
  0x1b   : > { %1886 = vmatprep.mubr.msk.bf16.mxu1 %vm436_vm1, %v472_v17  ;;  %1922 = vmatprep.mubr.msk.bf16.mxu0 %vm436_vm1, %v471_v18  ;;  %v473_v20 = vld [vmem:[#allocation2 + $0x10] sm:$0xff]  ;;  %v474_v22 = vld [vmem:[#allocation2 + $0x18] sm:$0xff]  ;;  %v2112_v32 = vld [vmem:[%s293_s12 + $0x8] sm:$0xff]   ;;  %469 = vst.msk [vmem:[#allocation2 + $0x80] sm:$0xff] %vm436_vm1, %v2111_v31 }
  0x1c   : > { %1887 = vmatmul.mubr.msk.bf16.vlgmr.msra.gmra.mrb[0].mxu1 %vm436_vm1, %v473_v20  ;;  %1923 = vmatmul.mubr.msk.bf16.vlgmr.msra.gmra.mrb[0].mxu0 %vm436_vm1, %v472_v17  ;;  %v475_v26 = vld [vmem:[#allocation2 + $0x20] sm:$0xff]  ;;  %v476_v28 = vld [vmem:[#allocation2 + $0x28] sm:$0xff]  ;;  %470 = vst.msk [vmem:[#allocation2 + $0x88] sm:$0xff] %vm436_vm1, %v2112_v32 }
  0x1d   : > { %1992 = vmatpush3.bf16.msra.mxu1 %v2090_v1  ;;  %1955 = vmatpush3.bf16.msra.mxu0 %v2095_v6  ;;  %v477_v33 = vld [vmem:[#allocation2 + $0x30] sm:$0xff]  ;;  %v478_v34 = vld [vmem:[#allocation2 + $0x38] sm:$0xff]  ;;  %v2325_v6 = vld [vmem:[%s2468_s3 + $0x1] ss:$0 sm:$0xff] }
  0x1e   : > { %1890 = vmatprep.mubr.msk.bf16.mxu1 %vm436_vm1, %v474_v22  ;;  %1926 = vmatprep.mubr.msk.bf16.mxu0 %vm436_vm1, %v473_v20  ;;  %v479_v35 = vld [vmem:[#allocation2 + $0x40] sm:$0xff]  ;;  %v480_v36 = vld [vmem:[#allocation2 + $0x48] sm:$0xff] }
  0x1f   : > { %2061 = vmatprep.subr.msk.bf16.mxu0 %vm552_vm0, %v2100_v15  ;;  %2060 = vmatprep.subr.msk.bf16.mxu1 %vm552_vm0, %v2092_v3  ;;  %v481_v37 = vld [vmem:[#allocation2 + $0x50] sm:$0xff]  ;;  %v482_v38 = vld [vmem:[#allocation2 + $0x58] sm:$0xff]  ;;  %v2334_v15 = vld [vmem:[%s2468_s3 + $0x2] ss:$0 sm:$0xff] }
  0x20   : > { %v483_v39 = vld [vmem:[#allocation2 + $0x60] sm:$0xff]  ;;  %v484_v40 = vld [vmem:[#allocation2 + $0x68] sm:$0xff] }
  0x21   : > { %1957 = vmatpush3.bf16.msra.mxu0 %v971_v24  ;;  %1993 = vmatpush3.bf16.msra.mxu1 %v730_v5  ;;  %v485_v41 = vld [vmem:[#allocation2 + $0x70] sm:$0xff]  ;;  %v486_v42 = vld [vmem:[#allocation2 + $0x78] sm:$0xff] }
  0x22   : > { %v490_v43 = vld [vmem:[#allocation2 + $0x80] sm:$0xff] }
  0x23   : > { %v908_v44 = vld [vmem:[#allocation2 + $0x88] sm:$0xff] }
  0x24   : > { %1891 = vmatmul.mubr.msk.bf16.gmra.mrb[4].mxu1 %vm436_vm1, %v475_v26  ;;  %1927 = vmatmul.mubr.msk.bf16.gmra.mrb[4].mxu0 %vm436_vm1, %v474_v22 }
  0x25   : > { %1894 = vmatprep.mubr.msk.bf16.mxu1 %vm436_vm1, %v476_v28  ;;  %1930 = vmatprep.mubr.msk.bf16.mxu0 %vm436_vm1, %v475_v26 }
  0x2c   : > { %1895 = vmatmul.mubr.msk.bf16.gmra.mrb[8].mxu1 %vm436_vm1, %v477_v33  ;;  %1931 = vmatmul.mubr.msk.bf16.gmra.mrb[8].mxu0 %vm436_vm1, %v476_v28 }
  0x2d   : > { %1898 = vmatprep.mubr.msk.bf16.mxu1 %vm436_vm1, %v478_v34  ;;  %1934 = vmatprep.mubr.msk.bf16.mxu0 %vm436_vm1, %v477_v33 }
  0x34   : > { %1899 = vmatmul.mubr.msk.bf16.gmra.mrb[12].mxu1 %vm436_vm1, %v479_v35  ;;  %1935 = vmatmul.mubr.msk.bf16.gmra.mrb[12].mxu0 %vm436_vm1, %v478_v34 }
  0x35   : > { %1902 = vmatprep.mubr.msk.bf16.mxu1 %vm436_vm1, %v480_v36  ;;  %1958 = vmatprep.mubr.msk.bf16.mxu0 %vm436_vm1, %v473_v20 }
  0x3c   : > { %1903 = vmatmul.mubr.msk.bf16.gmra.mrb[16].mxu1 %vm436_vm1, %v481_v37  ;;  %1959 = vmatmul.mubr.msk.bf16.vlgmr.msra.gmra.mrb[0].mxu0 %vm436_vm1, %v474_v22 }
  0x3d   : > { %1906 = vmatprep.mubr.msk.bf16.mxu1 %vm436_vm1, %v482_v38  ;;  %1962 = vmatprep.mubr.msk.bf16.mxu0 %vm436_vm1, %v475_v26 }
  0x44   : > { %1907 = vmatmul.mubr.msk.bf16.gmra.mrb[20].mxu1 %vm436_vm1, %v483_v39  ;;  %1963 = vmatmul.mubr.msk.bf16.gmra.mrb[4].mxu0 %vm436_vm1, %v476_v28 }
  0x45   : > { %1910 = vmatprep.mubr.msk.bf16.mxu1 %vm436_vm1, %v484_v40  ;;  %1966 = vmatprep.mubr.msk.bf16.mxu0 %vm436_vm1, %v477_v33 }
  0x4c   : > { %1911 = vmatmul.mubr.msk.bf16.gmra.mrb[24].mxu1 %vm436_vm1, %v485_v41  ;;  %1967 = vmatmul.mubr.msk.bf16.gmra.mrb[8].mxu0 %vm436_vm1, %v478_v34 }
  0x4d   : > { %1914 = vmatprep.mubr.msk.bf16.mxu1 %vm436_vm1, %v486_v42  ;;  %1970 = vmatprep.mubr.msk.bf16.mxu0 %vm436_vm1, %v479_v35 }
  0x54   : > { %1915 = vmatmul.mubr.msk.bf16.gmra.mrb[28].mxu1 %vm436_vm1, %v490_v43  ;;  %1971 = vmatmul.mubr.msk.bf16.gmra.mrb[12].mxu0 %vm436_vm1, %v480_v36 }
  0x55   : > { %1938 = vmatprep.mubr.msk.bf16.mxu1 %vm436_vm1, %v479_v35  ;;  %1974 = vmatprep.mubr.msk.bf16.mxu0 %vm436_vm1, %v481_v37 }
  0x5c   : > { %1939 = vmatmul.mubr.msk.bf16.vlgmr.msra.gmra.mrb[16].mxu1 %vm436_vm1, %v480_v36  ;;  %1975 = vmatmul.mubr.msk.bf16.gmra.mrb[16].mxu0 %vm436_vm1, %v482_v38 }
  0x5d   : > { %1942 = vmatprep.mubr.msk.bf16.mxu1 %vm436_vm1, %v481_v37  ;;  %1978 = vmatprep.mubr.msk.bf16.mxu0 %vm436_vm1, %v483_v39 }
  0x64   : > { %1943 = vmatmul.mubr.msk.bf16.gmra.mrb[20].mxu1 %vm436_vm1, %v482_v38  ;;  %1979 = vmatmul.mubr.msk.bf16.gmra.mrb[20].mxu0 %vm436_vm1, %v484_v40 }
  0x65   : > { %1946 = vmatprep.mubr.msk.bf16.mxu1 %vm436_vm1, %v483_v39  ;;  %1982 = vmatprep.mubr.msk.bf16.mxu0 %vm436_vm1, %v485_v41 }
  0x6c   : > { %1947 = vmatmul.mubr.msk.bf16.gmra.mrb[24].mxu1 %vm436_vm1, %v484_v40  ;;  %1983 = vmatmul.mubr.msk.bf16.gmra.mrb[24].mxu0 %vm436_vm1, %v486_v42 }
  0x6d   : > { %1950 = vmatprep.mubr.msk.bf16.mxu1 %vm436_vm1, %v485_v41  ;;  %1986 = vmatprep.mubr.msk.bf16.mxu0 %vm436_vm1, %v490_v43 }
  0x74   : > { %1951 = vmatmul.mubr.msk.bf16.gmra.mrb[28].mxu1 %vm436_vm1, %v486_v42  ;;  %1987 = vmatmul.mubr.msk.bf16.gmra.mrb[28].mxu0 %vm436_vm1, %v908_v44 }
  0xef   : > { %v1888_v45 = vpop.f32.mrb[0].mxu1 }
  0xf0   : > { %v590_v46 = vpop.f32.mrb[1].mxu1 }
  0xf1   : > { %v1889_v47 = vpop.f32.mrb[2].mxu1 }
  0xf2   : > { %v593_v48 = vpop.f32.mrb[3].mxu1 }
  0xf7   : > { %v1892_v49 = vpop.f32.mrb[4].mxu1 }
  0xf8   : > { %v606_v50 = vpop.f32.mrb[5].mxu1 }
  0xf9   : > { %v1893_v51 = vpop.f32.mrb[6].mxu1 }
  0xfa   : > { %v609_v52 = vpop.f32.mrb[7].mxu1 }
  0xff   : > { %v1896_v53 = vpop.f32.mrb[8].mxu1 }
 0x100   : > { %v2302_v54 = vpop.f32.mrb[9].mxu1 }
 0x101   : > { %v2304_v55 = vpop.f32.mrb[10].mxu1 }
 0x102   : > { %v2306_v56 = vpop.f32.mrb[11].mxu1 }
 0x107   : > { %v2308_v57 = vpop.f32.mrb[12].mxu1 }
 0x108   : > { %v2310_v58 = vpop.f32.mrb[13].mxu1 }
 0x109   : > { %v2312_v59 = vpop.f32.mrb[14].mxu1 }
 0x10a   : > { %v2314_v60 = vpop.f32.mrb[15].mxu1 }
 0x10f   : > { %v1960_v61 = vpop.f32.mrb[0].mxu0 }
 0x110   : > { %v1994_v63 = vadd.f32 %v1960_v61, %v1888_v45  ;;  %v1007_v0 = vpop.f32.mrb[1].mxu0 }
 0x111   : > { %v1995_v1 = vadd.f32 %v1007_v0, %v590_v46  ;;  %v1961_v2 = vpop.f32.mrb[2].mxu0 }
 0x112   : > { %v1175_v3 = vadd.f32 %v1994_v63, %v2319_v62  ;;  %v1996_v4 = vadd.f32 %v1961_v2, %v1889_v47  ;;  %v1010_v5 = vpop.f32.mrb[3].mxu0 }
 0x113   : > { %v1173_v7 = vadd.f32 %v1995_v1, %v2319_v62  ;;  %v1997_v8 = vadd.f32 %v1010_v5, %v593_v48 }
 0x114   : > { %v1207_v9 = vmax.f32 %v1175_v3, 0.0  ;;  %v1176_v10 = vadd.f32 %v1996_v4, %v2319_v62 }
 0x115   : > { %v1205_v11 = vmax.f32 %v1173_v7, 0.0  ;;  %v1174_v12 = vadd.f32 %v1997_v8, %v2319_v62 }
 0x116   : > { %v1243_v13 = vmul.f32 %v2325_v6, %v1207_v9  ;;  %v1208_v14 = vmax.f32 %v1176_v10, 0.0 }
 0x117   : > { %v1241_v16 = vmul.f32 %v2325_v6, %v1205_v11  ;;  %v1206_v17 = vmax.f32 %v1174_v12, 0.0  ;;  %v1964_v18 = vpop.f32.mrb[4].mxu0 }
 0x118   : > { %v1244_v19 = vmul.f32 %v2325_v6, %v1208_v14  ;;  %v1998_v20 = vadd.f32 %v1964_v18, %v1892_v49  ;;  %v1023_v21 = vpop.f32.mrb[5].mxu0  ;;  %v1279_v25 = vadd.f32 %v2334_v15, %v1243_v13 }
 0x119   : > { %v1242_v22 = vmul.f32 %v2325_v6, %v1206_v17  ;;  %v1999_v23 = vadd.f32 %v1023_v21, %v606_v50  ;;  %v1965_v24 = vpop.f32.mrb[6].mxu0  ;;  %v1277_v30 = vadd.f32 %v2334_v15, %v1241_v16 }
 0x11a   : > { %v1280_v26 = vadd.f32 %v2334_v15, %v1244_v19  ;;  %v1179_v27 = vadd.f32 %v1998_v20, %v2319_v62  ;;  %v2000_v28 = vadd.f32 %v1965_v24, %v1893_v51  ;;  %v1026_v29 = vpop.f32.mrb[7].mxu0 }
 0x11b   : > { %v1278_v31 = vadd.f32 %v2334_v15, %v1242_v22  ;;  %v1177_v32 = vadd.f32 %v1999_v23, %v2319_v62  ;;  %v2001_v33 = vadd.f32 %v1026_v29, %v609_v52 }
 0x11c   : > { %v1741_v34 = vpack.c.bf16 %v1280_v26, %v1279_v25  ;;  %v1211_v35 = vmax.f32 %v1179_v27, 0.0  ;;  %v1180_v36 = vadd.f32 %v2000_v28, %v2319_v62 }
 0x11d   : > { %v1736_v37 = vpack.c.bf16 %v1278_v31, %v1277_v30  ;;  %v1209_v38 = vmax.f32 %v1177_v32, 0.0  ;;  %v1178_v39 = vadd.f32 %v2001_v33, %v2319_v62 }
 0x11e   : > { %1813 = vst [vmem:[%s2347_s25 + $0x8] sm:$0xff] %v1741_v34   ;;  %v1247_v40 = vmul.f32 %v2325_v6, %v1211_v35  ;;  %v1212_v41 = vmax.f32 %v1180_v36, 0.0 }
 0x11f   : > { %1737 = vst [vmem:[%s2347_s25] sm:$0xff] %v1736_v37   ;;  %v1245_v42 = vmul.f32 %v2325_v6, %v1209_v38  ;;  %v1210_v43 = vmax.f32 %v1178_v39, 0.0  ;;  %v1968_v44 = vpop.f32.mrb[8].mxu0 }
 0x120   : > { %v1248_v45 = vmul.f32 %v2325_v6, %v1212_v41  ;;  %v2002_v46 = vadd.f32 %v1968_v44, %v1896_v53  ;;  %v1039_v47 = vpop.f32.mrb[9].mxu0  ;;  %v1283_v51 = vadd.f32 %v2334_v15, %v1247_v40 }
 0x121   : > { %v1246_v48 = vmul.f32 %v2325_v6, %v1210_v43  ;;  %v2003_v49 = vadd.f32 %v1039_v47, %v2302_v54  ;;  %v1969_v50 = vpop.f32.mrb[10].mxu0  ;;  %v1281_v1 = vadd.f32 %v2334_v15, %v1245_v42 }
 0x122   : > { %v1284_v52 = vadd.f32 %v2334_v15, %v1248_v45  ;;  %v1183_v61 = vadd.f32 %v2002_v46, %v2319_v62  ;;  %v2004_v63 = vadd.f32 %v1969_v50, %v2304_v55  ;;  %v1042_v0 = vpop.f32.mrb[11].mxu0 }
 0x123   : > { %v1282_v53 = vadd.f32 %v2334_v15, %v1246_v48  ;;  %v1181_v2 = vadd.f32 %v2003_v49, %v2319_v62  ;;  %v2005_v54 = vadd.f32 %v1042_v0, %v2306_v56 }
 0x124   : > { %v1751_v3 = vpack.c.bf16 %v1284_v52, %v1283_v51  ;;  %v1215_v4 = vmax.f32 %v1183_v61, 0.0  ;;  %v1184_v5 = vadd.f32 %v2004_v63, %v2319_v62 }
 0x125   : > { %v1746_v7 = vpack.c.bf16 %v1282_v53, %v1281_v1  ;;  %v1213_v8 = vmax.f32 %v1181_v2, 0.0  ;;  %v1182_v9 = vadd.f32 %v2005_v54, %v2319_v62 }
 0x126   : > { %1815 = vst [vmem:[%s2347_s25 + $0x18] sm:$0xff] %v1751_v3   ;;  %v1251_v55 = vmul.f32 %v2325_v6, %v1215_v4  ;;  %v1216_v10 = vmax.f32 %v1184_v5, 0.0 }
 0x127   : > { %1814 = vst [vmem:[%s2347_s25 + $0x10] sm:$0xff] %v1746_v7   ;;  %v1249_v11 = vmul.f32 %v2325_v6, %v1213_v8  ;;  %v1214_v12 = vmax.f32 %v1182_v9, 0.0  ;;  %v1972_v13 = vpop.f32.mrb[12].mxu0 }
 0x128   : > { %v1252_v14 = vmul.f32 %v2325_v6, %v1216_v10  ;;  %v2006_v56 = vadd.f32 %v1972_v13, %v2308_v57  ;;  %v1055_v16 = vpop.f32.mrb[13].mxu0  ;;  %v1287_v20 = vadd.f32 %v2334_v15, %v1251_v55 }
 0x129   : > { %v1250_v17 = vmul.f32 %v2325_v6, %v1214_v12  ;;  %v2007_v18 = vadd.f32 %v1055_v16, %v2310_v58  ;;  %v1973_v19 = vpop.f32.mrb[14].mxu0  ;;  %v1285_v25 = vadd.f32 %v2334_v15, %v1249_v11 }
 0x12a   : > { %v1288_v21 = vadd.f32 %v2334_v15, %v1252_v14  ;;  %v1187_v22 = vadd.f32 %v2006_v56, %v2319_v62  ;;  %v2008_v23 = vadd.f32 %v1973_v19, %v2312_v59  ;;  %v1058_v24 = vpop.f32.mrb[15].mxu0 }
 0x12b   : > { %v1286_v57 = vadd.f32 %v2334_v15, %v1250_v17  ;;  %v1185_v26 = vadd.f32 %v2007_v18, %v2319_v62  ;;  %v2009_v58 = vadd.f32 %v1058_v24, %v2314_v60 }
 0x12c   : > { %v1761_v27 = vpack.c.bf16 %v1288_v21, %v1287_v20  ;;  %v1219_v28 = vmax.f32 %v1187_v22, 0.0  ;;  %v1188_v29 = vadd.f32 %v2008_v23, %v2319_v62 }
 0x12d   : > { %v1756_v30 = vpack.c.bf16 %v1286_v57, %v1285_v25  ;;  %v1217_v31 = vmax.f32 %v1185_v26, 0.0  ;;  %v1186_v32 = vadd.f32 %v2009_v58, %v2319_v62 }
 0x12e   : > { %1817 = vst [vmem:[%s2347_s25 + $0x28] sm:$0xff] %v1761_v27   ;;  %v1255_v59 = vmul.f32 %v2325_v6, %v1219_v28  ;;  %v1220_v33 = vmax.f32 %v1188_v29, 0.0 }
 0x12f   : > { %1816 = vst [vmem:[%s2347_s25 + $0x20] sm:$0xff] %v1756_v30   ;;  %v1253_v34 = vmul.f32 %v2325_v6, %v1217_v31  ;;  %v1218_v35 = vmax.f32 %v1186_v32, 0.0  ;;  %v1940_v36 = vpop.f32.mrb[16].mxu1  ;;  %v1976_v37 = vpop.f32.mrb[16].mxu0 }
 0x130   : > { %v1256_v60 = vmul.f32 %v2325_v6, %v1220_v33  ;;  %v2010_v38 = vadd.f32 %v1976_v37, %v1940_v36  ;;  %v830_v39 = vpop.f32.mrb[17].mxu1  ;;  %v1071_v40 = vpop.f32.mrb[17].mxu0  ;;  %v1291_v45 = vadd.f32 %v2334_v15, %v1255_v59 }
 0x131   : > { %v1254_v41 = vmul.f32 %v2325_v6, %v1218_v35  ;;  %v2011_v42 = vadd.f32 %v1071_v40, %v830_v39  ;;  %v1941_v43 = vpop.f32.mrb[18].mxu1  ;;  %v1977_v44 = vpop.f32.mrb[18].mxu0  ;;  %v1289_v51 = vadd.f32 %v2334_v15, %v1253_v34 }
 0x132   : > { %v1292_v46 = vadd.f32 %v2334_v15, %v1256_v60  ;;  %v1191_v47 = vadd.f32 %v2010_v38, %v2319_v62  ;;  %v2012_v48 = vadd.f32 %v1977_v44, %v1941_v43  ;;  %v833_v49 = vpop.f32.mrb[19].mxu1  ;;  %v1074_v50 = vpop.f32.mrb[19].mxu0 }
 0x133   : > { %v1290_v52 = vadd.f32 %v2334_v15, %v1254_v41  ;;  %v1189_v61 = vadd.f32 %v2011_v42, %v2319_v62  ;;  %v2013_v63 = vadd.f32 %v1074_v50, %v833_v49 }
 0x134   : > { %v1771_v0 = vpack.c.bf16 %v1292_v46, %v1291_v45  ;;  %v1223_v1 = vmax.f32 %v1191_v47, 0.0  ;;  %v1192_v53 = vadd.f32 %v2012_v48, %v2319_v62 }
 0x135   : > { %v1766_v2 = vpack.c.bf16 %v1290_v52, %v1289_v51  ;;  %v1221_v54 = vmax.f32 %v1189_v61, 0.0  ;;  %v1190_v3 = vadd.f32 %v2013_v63, %v2319_v62 }
 0x136   : > { %1819 = vst [vmem:[%s2347_s25 + $0x38] sm:$0xff] %v1771_v0   ;;  %v1259_v4 = vmul.f32 %v2325_v6, %v1223_v1  ;;  %v1224_v5 = vmax.f32 %v1192_v53, 0.0 }
 0x137   : > { %1818 = vst [vmem:[%s2347_s25 + $0x30] sm:$0xff] %v1766_v2   ;;  %v1257_v7 = vmul.f32 %v2325_v6, %v1221_v54  ;;  %v1222_v8 = vmax.f32 %v1190_v3, 0.0  ;;  %v1944_v9 = vpop.f32.mrb[20].mxu1  ;;  %v1980_v55 = vpop.f32.mrb[20].mxu0 }
 0x138   : > { %v1260_v10 = vmul.f32 %v2325_v6, %v1224_v5  ;;  %v2014_v11 = vadd.f32 %v1980_v55, %v1944_v9  ;;  %v846_v12 = vpop.f32.mrb[21].mxu1  ;;  %v1087_v13 = vpop.f32.mrb[21].mxu0  ;;  %v1295_v18 = vadd.f32 %v2334_v15, %v1259_v4 }
 0x139   : > { %v1258_v14 = vmul.f32 %v2325_v6, %v1222_v8  ;;  %v2015_v56 = vadd.f32 %v1087_v13, %v846_v12  ;;  %v1945_v16 = vpop.f32.mrb[22].mxu1  ;;  %v1981_v17 = vpop.f32.mrb[22].mxu0  ;;  %v1293_v24 = vadd.f32 %v2334_v15, %v1257_v7 }
 0x13a   : > { %v1296_v19 = vadd.f32 %v2334_v15, %v1260_v10  ;;  %v1195_v20 = vadd.f32 %v2014_v11, %v2319_v62  ;;  %v2016_v21 = vadd.f32 %v1981_v17, %v1945_v16  ;;  %v849_v22 = vpop.f32.mrb[23].mxu1  ;;  %v1090_v23 = vpop.f32.mrb[23].mxu0 }
 0x13b   : > { %v1294_v25 = vadd.f32 %v2334_v15, %v1258_v14  ;;  %v1193_v57 = vadd.f32 %v2015_v56, %v2319_v62  ;;  %v2017_v26 = vadd.f32 %v1090_v23, %v849_v22 }
 0x13c   : > { %v1781_v58 = vpack.c.bf16 %v1296_v19, %v1295_v18  ;;  %v1227_v27 = vmax.f32 %v1195_v20, 0.0  ;;  %v1196_v28 = vadd.f32 %v2016_v21, %v2319_v62 }
 0x13d   : > { %v1776_v29 = vpack.c.bf16 %v1294_v25, %v1293_v24  ;;  %v1225_v30 = vmax.f32 %v1193_v57, 0.0  ;;  %v1194_v31 = vadd.f32 %v2017_v26, %v2319_v62 }
 0x13e   : > { %1821 = vst [vmem:[%s2347_s25 + $0x48] sm:$0xff] %v1781_v58   ;;  %v1263_v32 = vmul.f32 %v2325_v6, %v1227_v27  ;;  %v1228_v59 = vmax.f32 %v1196_v28, 0.0 }
 0x13f   : > { %1820 = vst [vmem:[%s2347_s25 + $0x40] sm:$0xff] %v1776_v29   ;;  %v1261_v33 = vmul.f32 %v2325_v6, %v1225_v30  ;;  %v1226_v34 = vmax.f32 %v1194_v31, 0.0  ;;  %v1948_v35 = vpop.f32.mrb[24].mxu1  ;;  %v1984_v36 = vpop.f32.mrb[24].mxu0 }
 0x140   : > { %v1264_v37 = vmul.f32 %v2325_v6, %v1228_v59  ;;  %v2018_v60 = vadd.f32 %v1984_v36, %v1948_v35  ;;  %v862_v38 = vpop.f32.mrb[25].mxu1  ;;  %v1103_v39 = vpop.f32.mrb[25].mxu0  ;;  %v1299_v44 = vadd.f32 %v2334_v15, %v1263_v32 }
 0x141   : > { %v1262_v40 = vmul.f32 %v2325_v6, %v1226_v34  ;;  %v2019_v41 = vadd.f32 %v1103_v39, %v862_v38  ;;  %v1949_v42 = vpop.f32.mrb[26].mxu1  ;;  %v1985_v43 = vpop.f32.mrb[26].mxu0  ;;  %v1297_v50 = vadd.f32 %v2334_v15, %v1261_v33 }
 0x142   : > { %v1300_v45 = vadd.f32 %v2334_v15, %v1264_v37  ;;  %v1199_v46 = vadd.f32 %v2018_v60, %v2319_v62  ;;  %v2020_v47 = vadd.f32 %v1985_v43, %v1949_v42  ;;  %v865_v48 = vpop.f32.mrb[27].mxu1  ;;  %v1106_v49 = vpop.f32.mrb[27].mxu0 }
 0x143   : > { %v1298_v51 = vadd.f32 %v2334_v15, %v1262_v40  ;;  %v1197_v52 = vadd.f32 %v2019_v41, %v2319_v62  ;;  %v2021_v61 = vadd.f32 %v1106_v49, %v865_v48 }
 0x144   : > { %v1791_v63 = vpack.c.bf16 %v1300_v45, %v1299_v44  ;;  %v1231_v0 = vmax.f32 %v1199_v46, 0.0  ;;  %v1200_v1 = vadd.f32 %v2020_v47, %v2319_v62 }
 0x145   : > { %v1786_v53 = vpack.c.bf16 %v1298_v51, %v1297_v50  ;;  %v1229_v2 = vmax.f32 %v1197_v52, 0.0  ;;  %v1198_v54 = vadd.f32 %v2021_v61, %v2319_v62 }
 0x146   : > { %1823 = vst [vmem:[%s2347_s25 + $0x58] sm:$0xff] %v1791_v63   ;;  %v1267_v3 = vmul.f32 %v2325_v6, %v1231_v0  ;;  %v1232_v4 = vmax.f32 %v1200_v1, 0.0 }
 0x147   : > { %1822 = vst [vmem:[%s2347_s25 + $0x50] sm:$0xff] %v1786_v53   ;;  %v1265_v5 = vmul.f32 %v2325_v6, %v1229_v2  ;;  %v1230_v7 = vmax.f32 %v1198_v54, 0.0  ;;  %v1952_v8 = vpop.f32.mrb[28].mxu1  ;;  %v1988_v9 = vpop.f32.mrb[28].mxu0 }
 0x148   : > { %v1268_v55 = vmul.f32 %v2325_v6, %v1232_v4  ;;  %v2022_v10 = vadd.f32 %v1988_v9, %v1952_v8  ;;  %v878_v11 = vpop.f32.mrb[29].mxu1  ;;  %v1119_v12 = vpop.f32.mrb[29].mxu0  ;;  %v1303_v17 = vadd.f32 %v2334_v15, %v1267_v3 }
 0x149   : > { %v1266_v13 = vmul.f32 %v2325_v6, %v1230_v7  ;;  %v2023_v14 = vadd.f32 %v1119_v12, %v878_v11  ;;  %v1953_v56 = vpop.f32.mrb[30].mxu1  ;;  %v1989_v16 = vpop.f32.mrb[30].mxu0  ;;  %v1301_v23 = vadd.f32 %v2334_v15, %v1265_v5 }
 0x14a   : > { %v1304_v18 = vadd.f32 %v2334_v15, %v1268_v55  ;;  %v1203_v19 = vadd.f32 %v2022_v10, %v2319_v62  ;;  %v2024_v20 = vadd.f32 %v1989_v16, %v1953_v56  ;;  %v881_v21 = vpop.f32.mrb[31].mxu1  ;;  %v1122_v22 = vpop.f32.mrb[31].mxu0 }
 0x14b   : > { %v1302_v24 = vadd.f32 %v2334_v15, %v1266_v13  ;;  %v1201_v25 = vadd.f32 %v2023_v14, %v2319_v62  ;;  %v2025_v57 = vadd.f32 %v1122_v22, %v881_v21 }
 0x14c   : > { %v1801_v26 = vpack.c.bf16 %v1304_v18, %v1303_v17  ;;  %v1235_v58 = vmax.f32 %v1203_v19, 0.0  ;;  %v1204_v27 = vadd.f32 %v2024_v20, %v2319_v62 }
 0x14d   : > { %v1796_v28 = vpack.c.bf16 %v1302_v24, %v1301_v23  ;;  %v1233_v29 = vmax.f32 %v1201_v25, 0.0  ;;  %v1202_v30 = vadd.f32 %v2025_v57, %v2319_v62 }
 0x14e   : > { %1825 = vst [vmem:[%s2347_s25 + $0x68] sm:$0xff] %v1801_v26   ;;  %v1271_v31 = vmul.f32 %v2325_v6, %v1235_v58  ;;  %v1236_v32 = vmax.f32 %v1204_v27, 0.0 }
 0x14f   : > { %1824 = vst [vmem:[%s2347_s25 + $0x60] sm:$0xff] %v1796_v28   ;;  %v1269_v59 = vmul.f32 %v2325_v6, %v1233_v29  ;;  %v1234_v33 = vmax.f32 %v1202_v30, 0.0 }
 0x150   : > { %v1272_v34 = vmul.f32 %v2325_v6, %v1236_v32  ;;  %v1307_v36 = vadd.f32 %v2334_v15, %v1271_v31 }
 0x151   : > { %v1270_v35 = vmul.f32 %v2325_v6, %v1234_v33  ;;  %v1305_v60 = vadd.f32 %v2334_v15, %v1269_v59 }
 0x152   : > { %v1308_v37 = vadd.f32 %v2334_v15, %v1272_v34 }
 0x153   : > { %v1306_v62 = vadd.f32 %v2334_v15, %v1270_v35 }
 0x154   : > { %v1811_v38 = vpack.c.bf16 %v1308_v37, %v1307_v36 }
 0x155   : > { %v1806_v39 = vpack.c.bf16 %v1306_v62, %v1305_v60 }
 0x156   : > { %1827 = vst [vmem:[%s2347_s25 + $0x78] sm:$0xff] %v1811_v38  }
 0x157   : > { %1826 = vst [vmem:[%s2347_s25 + $0x70] sm:$0xff] %v1806_v39  }
 0x158 PF: > { %s14_s17 = sadd.s32 1, %s2135_s17   ;;  %s2470_s15 = smov %s2131_s16 }
 0x159   : > { %p11_p5 = scmp.ge.s32.totalorder %s14_s17, 4   ;;  %s2471_s16 = smov %s2473_s18 }
 0x15b   :  { %13 = sbr.rel (!%p11_p5) target bundleno = 2 (0x2), region = 71 }

</bundles_post_ra>
